<compile_context>
chip_gen: v7x
topology: tpu7x:2x2x1
jax: 0.10.0
libtpu: 0.0.40
codegen_flags: <defaults>
</compile_context>

<pallas_src>
import functools

import jax
import jax.numpy as jnp
from jax.experimental import pallas as pl
from jax.experimental.pallas import tpu as pltpu

_HIGHEST = jax.lax.Precision.HIGHEST
_BN_EPS = 1e-5


def _round_up(x, m):
    return ((x + m - 1) // m) * m


def _choose_row_tile(m, cap=1024):
    """Largest row tile t <= cap with t % 8 == 0 and t | m (no padding).
    Falls back to a padded tile only if no such divisor exists."""
    for t in range(min(cap, m), 7, -1):
        if m % t == 0 and t % 8 == 0:
            return t, m
    t = min(cap, _round_up(m, 8))
    return t, _round_up(m, t)


# ----------------------------------------------------------------------------
# 1. Farthest point sampling (lane-major working set)
# ----------------------------------------------------------------------------
def _fps_kernel(xyz_ref, out_ref, sel_ref):
    # TODO(synk): reference FPS seeds with torch.randint; we start from index 0
    # (a valid FPS seed but not bit-identical to torch).
    x = xyz_ref[0]                                        # [3, N]
    n = x.shape[1]
    npoint = out_ref.shape[1]
    ids = jax.lax.broadcasted_iota(jnp.int32, (1, n), 1)

    def body(i, carry):
        far, dist = carry                                 # far: scalar, dist: [1, N]
        onehot = (ids == far).astype(jnp.float32)         # [1, N]
        sel_ref[pl.ds(i, 1), :] = onehot                  # selection row i
        centroid = jnp.sum(x * onehot, axis=1, keepdims=True)       # [3, 1]
        diff = x - centroid
        dist = jnp.minimum(dist, jnp.sum(diff * diff, axis=0, keepdims=True))
        m = jnp.max(dist, axis=1, keepdims=True)
        far_new = jnp.min(jnp.where(dist == m, ids, n)).astype(jnp.int32)
        return far_new, dist

    jax.lax.fori_loop(0, npoint, body,
                      (jnp.int32(0), jnp.full((1, n), 1e10, jnp.float32)))
    # one-hot gather of the sampled coordinates on the MXU (exact at HIGHEST)
    out_ref[0] = jax.lax.dot_general(
        sel_ref[...], x, (((1,), (1,)), ((), ())),
        preferred_element_type=jnp.float32, precision=_HIGHEST)


def farthest_point_sample_xyz(xyz_cm, npoint):
    """xyz_cm [B, 3, N] (channel-major) -> new_xyz [B, npoint, 3] (row-major)."""
    B, _, N = xyz_cm.shape
    return pl.pallas_call(
        _fps_kernel,
        out_shape=jax.ShapeDtypeStruct((B, npoint, 3), jnp.float32),
        grid=(B,),
        in_specs=[pl.BlockSpec((1, 3, N), lambda b: (b, 0, 0))],
        out_specs=pl.BlockSpec((1, npoint, 3), lambda b: (b, 0, 0)),
        scratch_shapes=[pltpu.VMEM((npoint, N), jnp.float32)],
        compiler_params=pltpu.CompilerParams(dimension_semantics=("parallel",)),
    )(xyz_cm)


# ----------------------------------------------------------------------------
# 2. Ball query + K-neighbour gather with fused MLP layer 0 (chunked over N)
# ----------------------------------------------------------------------------
def _group_kernel(r2, K, NC, nxyz_ref, xyz_ref, xsq_ref, vproj_ref, center_ref,
                  out_ref, stat_ref, acc_ref, cnt_ref):
    c = pl.program_id(2)

    @pl.when(c == 0)
    def _():
        cnt_ref[...] = jnp.zeros_like(cnt_ref)
        acc_ref[...] = jnp.zeros_like(acc_ref)

    q = nxyz_ref[0]                                       # [TS, 3]
    qsq = jnp.sum(q * q, axis=-1, keepdims=True)          # [TS, 1]
    xc = xyz_ref[0]                                       # [3, NC]
    xsq = xsq_ref[0]                                      # [1, NC]
    # squared distance of every query to every point of this N-chunk
    d = (qsq + xsq
         - 2.0 * jnp.dot(q, xc, preferred_element_type=jnp.float32,
                         precision=_HIGHEST))             # [TS, NC]
    mask = (d <= r2).astype(jnp.float32)                  # in-ball indicator
    # inclusive prefix count within the chunk via a small in-register triu
    # (no resident [N,N] matrix); made global with the running per-query count.
    ri = jax.lax.broadcasted_iota(jnp.int32, (NC, NC), 0)
    cj = jax.lax.broadcasted_iota(jnp.int32, (NC, NC), 1)
    tri = (ri <= cj).astype(jnp.float32)
    rank = jnp.dot(mask, tri, preferred_element_type=jnp.float32) + cnt_ref[...]

    vproj = vproj_ref[0]                                  # [NC, C0] = vals @ W0
    for k in range(K):
        # one-hot of the (k+1)-th in-ball index (unique across all chunks)
        sel = jnp.where(rank == float(k + 1), mask, 0.0)
        acc_ref[k] += jnp.dot(sel, vproj, preferred_element_type=jnp.float32,
                              precision=_HIGHEST)
    cnt_ref[...] = rank[:, -1:]                           # running in-ball count

    @pl.when(c == pl.num_programs(2) - 1)
    def _():
        center = center_ref[0]                            # [TS, C0] = q @ W0[xyz rows]
        cnt = cnt_ref[...]                                # [TS, 1]
        first = acc_ref[0]                                # group_first padding value
        c0 = center.shape[-1]
        ssum = jnp.zeros((1, c0), jnp.float32)
        ssq = jnp.zeros((1, c0), jnp.float32)
        for k in range(K):
            val = jnp.where(cnt >= float(k + 1), acc_ref[k], first) - center
            out_ref[0, k] = val.astype(out_ref.dtype)     # contiguous [TS,C0] slab
            ssum = ssum + jnp.sum(val, axis=0, keepdims=True)
            ssq = ssq + jnp.sum(val * val, axis=0, keepdims=True)
        stat_ref[0] = jnp.concatenate([ssum, ssq], axis=0)


def group_project(new_xyz_rm, xyz_cm, xyz_sq, vproj, center0, radius, K, TS, NC):
    """-> (y0 [B*(S/TS), K, TS, C0] bf16, per-tile stats [B*(S/TS), 2, C0] f32).
    y0 is the layer-0 pre-BN activation of the grouped, centered features."""
    B, S, _ = new_xyz_rm.shape
    N = xyz_cm.shape[-1]
    C0 = vproj.shape[-1]
    st = S // TS
    kernel = functools.partial(_group_kernel, float(radius) ** 2, K, NC)
    return pl.pallas_call(
        kernel,
        out_shape=(jax.ShapeDtypeStruct((B * st, K, TS, C0), jnp.bfloat16),
                   jax.ShapeDtypeStruct((B * st, 2, C0), jnp.float32)),
        grid=(B, st, N // NC),
        in_specs=[
            pl.BlockSpec((1, TS, 3), lambda b, s, c: (b, s, 0)),
            pl.BlockSpec((1, 3, NC), lambda b, s, c: (b, 0, c)),
            pl.BlockSpec((1, 1, NC), lambda b, s, c: (b, 0, c)),
            pl.BlockSpec((1, NC, C0), lambda b, s, c: (b, c, 0)),
            pl.BlockSpec((1, TS, C0), lambda b, s, c: (b, s, 0)),
        ],
        out_specs=(
            pl.BlockSpec((1, K, TS, C0), lambda b, s, c, st=st: (b * st + s, 0, 0, 0)),
            pl.BlockSpec((1, 2, C0), lambda b, s, c, st=st: (b * st + s, 0, 0)),
        ),
        scratch_shapes=[pltpu.VMEM((K, TS, C0), jnp.float32),
                        pltpu.VMEM((TS, 1), jnp.float32)],
        compiler_params=pltpu.CompilerParams(
            dimension_semantics=("parallel", "parallel", "arbitrary")),
    )(new_xyz_rm, xyz_cm, xyz_sq, vproj, center0)


# ----------------------------------------------------------------------------
# 3. Conv1x1 layers 1..L-1 with fused previous-layer BN/ReLU (bf16 activations)
# ----------------------------------------------------------------------------
def _mlp_fused_kernel(m_true, tm, need_mask, x_ref, stat_in_ref, g_ref, b_ref,
                      w_ref, y_ref, stat_ref):
    # previous layer's training-mode BN (biased var, eps=1e-5) + ReLU on load
    x = x_ref[...].astype(jnp.float32)
    s = stat_in_ref[...]
    inv_m = 1.0 / float(m_true)
    mean = s[0:1, :] * inv_m
    var = jnp.maximum(s[1:2, :] * inv_m - mean * mean, 0.0)
    scale = jax.lax.rsqrt(var + _BN_EPS) * g_ref[...]
    x = jnp.maximum((x - mean) * scale + b_ref[...], 0.0)
    if need_mask:
        # pad rows must stay exactly zero so they contribute nothing downstream
        rows = pl.program_id(0) * tm + jax.lax.broadcasted_iota(jnp.int32, (tm, 1), 0)
        x = jnp.where(rows < m_true, x, 0.0)
    y = jnp.dot(x.astype(jnp.bfloat16), w_ref[...],
                preferred_element_type=jnp.float32)
    y_ref[...] = y.astype(y_ref.dtype)                    # bf16 activation to HBM
    stat_ref[0] = jnp.concatenate(
        [jnp.sum(y, axis=0, keepdims=True),
         jnp.sum(y * y, axis=0, keepdims=True)], axis=0)  # f32 partial BN stats


def _mlp_layer(x, stats, gamma, beta, w_bf16, tm, m_true):
    Mp, Cin = x.shape
    Cout = w_bf16.shape[1]
    T = Mp // tm
    need_mask = (Mp != m_true)
    kernel = functools.partial(_mlp_fused_kernel, m_true, tm, need_mask)
    y, pstats = pl.pallas_call(
        kernel,
        out_shape=(jax.ShapeDtypeStruct((Mp, Cout), jnp.bfloat16),
                   jax.ShapeDtypeStruct((T, 2, Cout), jnp.float32)),
        grid=(T,),
        in_specs=[pl.BlockSpec((tm, Cin), lambda i: (i, 0)),
                  pl.BlockSpec((2, Cin), lambda i: (0, 0)),
                  pl.BlockSpec((1, Cin), lambda i: (0, 0)),
                  pl.BlockSpec((1, Cin), lambda i: (0, 0)),
                  pl.BlockSpec((Cin, Cout), lambda i: (0, 0))],
        out_specs=(pl.BlockSpec((tm, Cout), lambda i: (i, 0)),
                   pl.BlockSpec((1, 2, Cout), lambda i: (i, 0, 0))),
        compiler_params=pltpu.CompilerParams(dimension_semantics=("parallel",)),
    )(x, stats, gamma, beta, w_bf16)
    return y, jnp.sum(pstats, axis=0)          # reduce per-tile partials -> [2, Cout]


# ----------------------------------------------------------------------------
# 4. Final BN + ReLU + max over the K neighbours
# ----------------------------------------------------------------------------
def _pool_kernel(m_true, y_ref, stat_ref, g_ref, b_ref, out_ref):
    y = y_ref[...].astype(jnp.float32)                    # [tg, K, TS, C]
    s = stat_ref[...]
    inv_m = 1.0 / float(m_true)
    mean = s[0:1, :] * inv_m
    var = jnp.maximum(s[1:2, :] * inv_m - mean * mean, 0.0)
    scale = jax.lax.rsqrt(var + _BN_EPS) * g_ref[...]
    z = jnp.maximum((y - mean) * scale + b_ref[...], 0.0)
    out_ref[...] = jnp.max(z, axis=1)                     # max over the K neighbours


def bn_relu_maxpool(y4, stats, gamma, beta, m_true, vmem_budget=4 * 1024 * 1024):
    G, K, TS, C = y4.shape
    per_g = K * TS * C * y4.dtype.itemsize
    tg = 1
    for t in range(G, 0, -1):                # largest divisor of G within budget
        if G % t == 0 and t * per_g <= vmem_budget:
            tg = t
            break
    kernel = functools.partial(_pool_kernel, m_true)
    return pl.pallas_call(
        kernel,
        out_shape=jax.ShapeDtypeStruct((G, TS, C), jnp.float32),
        grid=(G // tg,),
        in_specs=[pl.BlockSpec((tg, K, TS, C), lambda i: (i, 0, 0, 0)),
                  pl.BlockSpec((2, C), lambda i: (0, 0)),
                  pl.BlockSpec((1, C), lambda i: (0, 0)),
                  pl.BlockSpec((1, C), lambda i: (0, 0))],
        out_specs=pl.BlockSpec((tg, TS, C), lambda i: (i, 0, 0)),
        compiler_params=pltpu.CompilerParams(dimension_semantics=("parallel",)),
    )(y4, stats, gamma, beta)


# ----------------------------------------------------------------------------
# Parameters + public forward
# ----------------------------------------------------------------------------
def init_params(key, in_channel, mlp_list):
    """Conv2d(last, out, 1) weights stored as [Cin, Cout].  The conv bias is
    dropped (cancelled exactly by training-mode BatchNorm).  BN gamma=1, beta=0."""
    params = []
    for i, mlp in enumerate(mlp_list):
        layers = []
        last = in_channel + 3
        for j, out in enumerate(mlp):
            kw = jax.random.fold_in(jax.random.fold_in(key, i), j)
            bound = 1.0 / (last ** 0.5)
            w = jax.random.uniform(kw, (last, out), jnp.float32, -bound, bound)
            gamma = jnp.ones((1, out), jnp.float32)
            beta = jnp.zeros((1, out), jnp.float32)
            layers.append((w, gamma, beta))
            last = out
        params.append(layers)
    return params


def pointnet_set_abstraction_msg(xyz, points, params, npoint, radius_list,
                                 nsample_list):
    """xyz [B,3,N], points [B,D,N] or None ->
       (new_xyz [B,3,npoint], new_points [B, sum(mlp[-1]), npoint])."""
    xyz = xyz.astype(jnp.float32)
    B, _, N = xyz.shape
    S = npoint

    new_xyz_rm = farthest_point_sample_xyz(xyz, S)                # [B, S, 3]
    xyz_sq = jnp.sum(xyz * xyz, axis=1, keepdims=True)            # [B, 1, N]
    xyz_rm = jnp.transpose(xyz, (0, 2, 1))                        # [B, N, 3]
    if points is not None:
        pts_rm = jnp.transpose(points.astype(jnp.float32), (0, 2, 1))
        vals = jnp.concatenate([pts_rm, xyz_rm], axis=-1)         # [B, N, D+3]
        D = pts_rm.shape[-1]
    else:
        vals = xyz_rm
        D = 0

    TS = 128 if S % 128 == 0 else S            # query tile (must divide S)
    if N % 512 == 0:
        NC = 512
    elif N % 256 == 0:
        NC = 256
    elif N % 128 == 0:
        NC = 128
    else:
        NC = N

    branch_outs = []
    for i, (radius, K) in enumerate(zip(radius_list, nsample_list)):
        layers = params[i]
        w0, g0, b0 = layers[0]
        C0 = w0.shape[1]
        # Fused layer 0: project the point features through W0 once per batch,
        # and precompute the centering term q @ W0[xyz rows] per query.
        vproj = jnp.einsum('bnd,dc->bnc', vals, w0, precision=_HIGHEST)
        center0 = jnp.einsum('bsd,dc->bsc', new_xyz_rm, w0[D:, :],
                             precision=_HIGHEST)
        y0, pstats0 = group_project(new_xyz_rm, xyz, xyz_sq, vproj, center0,
                                    radius, K, TS, NC)
        M = B * S * K
        stats = jnp.sum(pstats0, axis=0)                          # [2, C0]
        y = y0.reshape(M, C0)                                     # free (contiguous)
        prev_g, prev_b = g0, b0

        if len(layers) > 1:
            TM, Mp = _choose_row_tile(M, cap=1024)
            if Mp != M:
                y = jnp.pad(y, ((0, Mp - M), (0, 0)))
            for (w, gamma, beta) in layers[1:]:
                y, stats = _mlp_layer(y, stats, prev_g, prev_b,
                                      w.astype(jnp.bfloat16), TM, M)
                prev_g, prev_b = gamma, beta
            if Mp != M:
                y = y[:M]
        Clast = y.shape[-1]

        y4 = y.reshape(B * (S // TS), K, TS, Clast)               # free (contiguous)
        pooled = bn_relu_maxpool(y4, stats, prev_g, prev_b, M)    # [G, TS, C]
        branch_outs.append(pooled.reshape(B, S, Clast))

    new_points = jnp.concatenate(branch_outs, axis=-1)            # [B, S, sumC]
    return (jnp.transpose(new_xyz_rm, (0, 2, 1)),
            jnp.transpose(new_points, (0, 2, 1)))


if __name__ == "__main__":
    key = jax.random.PRNGKey(0)
    B, N, D_in = 2, 32, 6
    npoint = 16
    radius_list = [0.5, 1.0]
    nsample_list = [4, 8]
    mlp_list = [[16, 32], [32, 64]]

    k1, k2, kp = jax.random.split(key, 3)
    xyz = jax.random.normal(k1, (B, 3, N), jnp.float32)
    points = jax.random.normal(k2, (B, D_in, N), jnp.float32)
    params = init_params(kp, D_in, mlp_list)

    new_xyz, new_points = pointnet_set_abstraction_msg(
        xyz, points, params, npoint, radius_list, nsample_list)
    jax.block_until_ready((new_xyz, new_points))
    assert new_xyz.shape == (B, 3, npoint), new_xyz.shape
    assert new_points.shape == (B, sum(m[-1] for m in mlp_list), npoint), new_points.shape
    assert bool(jnp.all(jnp.isfinite(new_xyz)))
    assert bool(jnp.all(jnp.isfinite(new_points)))
    print("KERNEL_OK")
</pallas_src>

<mosaic_0001>
module attributes {stable_mosaic.version = 11 : i64} {
  func.func @_fps_kernel(%arg0: i32, %arg1: memref<1x3x32xf32, #tpu.memory_space<vmem>>, %arg2: memref<1x16x3xf32, #tpu.memory_space<vmem>>, %arg3: memref<16x32xf32, #tpu.memory_space<vmem>>) attributes {dimension_semantics = [#tpu.dimension_semantics<parallel>], iteration_bounds = array<i64: 2>, scalar_prefetch = 0 : i64, scratch_operands = 1 : i64, tpu.core_type = #tpu.core_type<tc>, window_params = [{transform_indices = @transform_0, window_bounds = array<i64: 1, 3, 32>}, {transform_indices = @transform_1, window_bounds = array<i64: 1, 16, 3>}]} {
    %c0 = arith.constant 0 : index
    %c0_0 = arith.constant 0 : index
    %c0_1 = arith.constant 0 : index
    %0 = vector.load %arg1[%c0, %c0_0, %c0_1] : memref<1x3x32xf32, #tpu.memory_space<vmem>>, vector<1x3x32xf32>
    %1 = vector.shape_cast %0 : vector<1x3x32xf32> to vector<3x32xf32>
    %2 = tpu.iota {dimensions = array<i32: 1>} : vector<1x32xi32>
    %cst = arith.constant 1.000000e+10 : f32
    %3 = vector.broadcast %cst : f32 to vector<1x32xf32>
    %c0_i32 = arith.constant 0 : i32
    %c0_i32_2 = arith.constant 0 : i32
    %c16_i32 = arith.constant 16 : i32
    %4 = arith.addi %c0_i32_2, %c16_i32 : i32
    %c1_i32 = arith.constant 1 : i32
    %5:2 = scf.for %arg4 = %c0_i32_2 to %4 step %c1_i32 iter_args(%arg5 = %c0_i32, %arg6 = %3) -> (i32, vector<1x32xf32>)  : i32 {
      %11 = vector.broadcast %arg5 : i32 to vector<1x32xi32>
      %12 = arith.cmpi eq, %2, %11 : vector<1x32xi32>
      %13 = arith.extui %12 : vector<1x32xi1> to vector<1x32xi32>
      %14 = arith.sitofp %13 : vector<1x32xi32> to vector<1x32xf32>
      %15 = arith.index_cast %arg4 : i32 to index
      %c0_10 = arith.constant 0 : index
      %16 = vector.load %arg3[%15, %c0_10] : memref<16x32xf32, #tpu.memory_space<vmem>>, vector<1x32xf32>
      tpu.vector_store %arg3[%15, %c0_10], %14 {strides = array<i32>} : memref<16x32xf32, #tpu.memory_space<vmem>>, vector<1x32xf32>,
      %17 = vector.broadcast %14 : vector<1x32xf32> to vector<3x32xf32>
      %18 = arith.mulf %1, %17 : vector<3x32xf32>
      %cst_11 = arith.constant dense<0.000000e+00> : vector<3xf32>
      %19 = vector.multi_reduction <add>, %18, %cst_11 [1] : vector<3x32xf32> to vector<3xf32>
      %20 = vector.shape_cast %19 : vector<3xf32> to vector<3x1xf32>
      %21 = vector.broadcast %20 : vector<3x1xf32> to vector<3x32xf32>
      %22 = arith.subf %1, %21 : vector<3x32xf32>
      %23 = arith.mulf %22, %22 : vector<3x32xf32>
      %cst_12 = arith.constant dense<0.000000e+00> : vector<32xf32>
      %24 = vector.multi_reduction <add>, %23, %cst_12 [0] : vector<3x32xf32> to vector<32xf32>
      %25 = vector.shape_cast %24 : vector<32xf32> to vector<1x32xf32>
      %26 = arith.minimumf %arg6, %25 : vector<1x32xf32>
      %cst_13 = arith.constant dense<0xFF800000> : vector<1xf32>
      %27 = vector.multi_reduction <maximumf>, %26, %cst_13 [1] : vector<1x32xf32> to vector<1xf32>
      %28 = vector.shape_cast %27 : vector<1xf32> to vector<1x1xf32>
      %29 = vector.broadcast %28 : vector<1x1xf32> to vector<1x32xf32>
      %30 = arith.cmpf oeq, %26, %29 : vector<1x32xf32>
      %c32_i32 = arith.constant 32 : i32
      %31 = vector.broadcast %c32_i32 : i32 to vector<1x32xi32>
      %32 = arith.select %30, %2, %31 : vector<1x32xi1>, vector<1x32xi32>
      %33 = vector.shape_cast %32 : vector<1x32xi32> to vector<1x1x32xi32>
      %cst_14 = arith.constant dense<2147483647> : vector<1xi32>
      %34 = vector.multi_reduction <minsi>, %33, %cst_14 [1, 2] : vector<1x1x32xi32> to vector<1xi32>
      %35 = vector.shape_cast %34 : vector<1xi32> to vector<1x1x1xi32>
      %36 = vector.extract %35[0, 0, 0] : i32 from vector<1x1x1xi32>
      scf.yield %36, %26 : i32, vector<1x32xf32>
    }
    %c16_i32_3 = arith.constant 16 : i32
    %c0_4 = arith.constant 0 : index
    %c0_5 = arith.constant 0 : index
    %6 = vector.load %arg3[%c0_4, %c0_5] : memref<16x32xf32, #tpu.memory_space<vmem>>, vector<16x32xf32>
    %cst_6 = arith.constant dense<0.000000e+00> : vector<16x3xf32>
    %7 = tpu.matmul %6, %1, %cst_6 {dimension_numbers = #tpu.dot_dimension_numbers<[1], [1], [0], [0], [0, 0, 1, 0], [], []>, precision = #tpu.contract_precision<fp32>} : vector<16x32xf32>, vector<3x32xf32>, vector<16x3xf32> -> vector<16x3xf32>
    %c0_7 = arith.constant 0 : index
    %c0_8 = arith.constant 0 : index
    %c0_9 = arith.constant 0 : index
    %8 = vector.load %arg2[%c0_7, %c0_8, %c0_9] : memref<1x16x3xf32, #tpu.memory_space<vmem>>, vector<1x16x3xf32>
    %9 = vector.shape_cast %8 : vector<1x16x3xf32> to vector<16x3xf32>
    %10 = vector.shape_cast %7 : vector<16x3xf32> to vector<1x16x3xf32>
    tpu.vector_store %arg2[%c0_7, %c0_8, %c0_9], %10 {strides = array<i32>} : memref<1x16x3xf32, #tpu.memory_space<vmem>>, vector<1x16x3xf32>,
    return
  }
  func.func @transform_0(%arg0: i32) -> (i32, i32, i32) {
    %c0_i32 = arith.constant 0 : i32
    %c0_i32_0 = arith.constant 0 : i32
    %c0_i32_1 = arith.constant 0 : i32
    return %arg0, %c0_i32, %c0_i32_0 : i32, i32, i32
  }
  func.func @transform_1(%arg0: i32) -> (i32, i32, i32) {
    %c0_i32 = arith.constant 0 : i32
    %c0_i32_0 = arith.constant 0 : i32
    %c0_i32_1 = arith.constant 0 : i32
    return %arg0, %c0_i32, %c0_i32_0 : i32, i32, i32
  }
}

</mosaic_0001>

<bundles_post_ra>
// kernel: tpu_custom_call.1
= control target key start
LH: loop header
LB: loop body
LE: loop exit
PB: predicated region body
PF: predicated region fallthrough
CT: control target
= control target key end

     0   :  { %s888_s6 = smov 0   ;;  %s932_s0 = inlined_call_operand.vmem [shape: f32[2,3,32], index: 0, kind: input, shape index: {}]   ;;  %s933_s1 = inlined_call_operand.vmem [shape: f32[2,16,3], index: 1, kind: output, shape index: {}]  }
   0x1 LB: > { %s740_s7 = sadd.s32 4294967295, %s863_s6   ;;  %p744_p0 = scmp.ge.s32.totalorder %s863_s6, 1  ;;  %s863_s6 = sphi %s888_s6, %s11_s6  }
   0x2   : > { %p86_p1 = scmp.lt.s32.totalorder %s863_s6, 3 }
   0x4   : > { %p87_p2 = pnand %p744_p0, %p86_p1 }
   0x5   : > { %p105_p3 = scmp.lt.s32.totalorder (!%p87_p2), %s740_s7, 1  ;;  %v115_v0 = vlaneseq (!%p87_p2)  ;;  %v865_v3 = vmov (!%p87_p2), 1e+10   ;;  %s906_s16 = smov (!%p87_p2), 0  }
   0x6   : > { %90 = sbr.rel (%p87_p2) target bundleno = 674 (0x2a2), region = 24  ;;  %s908_s17 = smov (!%p87_p2), 0  }
   0x7   : > { %v896_v1 = vand.u32 (!%p87_p2), 127, %v115_v0 }
   0xd   : > { %s935_s7 = smov (!%p105_p3, %s740_s7), 1 }
   0xe   : > { %s745_s8 = sshll.u32 %s935_s7, 2  ;;  %s751_s9 = sshll.u32 %s935_s7, 4 }
   0xf   : > { %s108_s12 = scalar_lea.vmem %s932_s0, %s745_s8  ;;  %s904_s15 = scalar_lea.vmem %s933_s1, %s751_s9 }
  0x10   : > { %v114_v2 = vld [vmem:[%s108_s12] sm:$0x7] }
  0x11 LB: >> { %v125_v4 = vstv %s871_s16  ;;  %vm130_vm0 = vcmask 253952   ;;  %v877_v5 = vmov 0.0   ;;  %vm133_vm2 = vcmask 256000   ;;  %s129_s18 = scalar_lea.vmem [#allocation2], %s875_s17  ;;  %s122_s17 = sadd.s32 1, %s875_s17   ;;  %s875_s17 = sphi %s908_s17, %s122_s17   ;;  %s871_s16 = sphi %s906_s16, %s811_s16   ;;  %v867_v3 = vphi %v865_v3, %v146_v3  }
  0x12   : >> { %vm126_vm1 = vcmp.eq.s32.totalorder %v896_v1, %v125_v4  ;;  %vm147_vm3 = vcmask 261120   ;;  %p119_p4 = scmp.ge.s32.totalorder %s122_s17, 16  }
  0x13   : >> { %v748_v6 = vsel %vm126_vm1, 1.0, %v877_v5  ;;  %v179_v34 = vsel (%p119_p4), %vm147_vm3, %v114_v2, 0  ;;  %vm670_vm6 = vcmask (%p119_p4), 23552  }
  0x14   : >> { %v132_v7 = vmul.f32 %v748_v6, %v114_v2  ;;  %131 = vst.msk [vmem:[%s129_s18] sm:$0x1] %vm130_vm0, %v748_v6  ;;  %v182_v37 = vand.u32 (%p119_p4), 4294901760, %v179_v34 }
  0x16   : >> { %v134_v8 = vsel %vm133_vm2, %v132_v7, 0.0  ;;  %785 = vmatprep.subr.mxu0 (%p119_p4), %v182_v37  ;;  %770 = vmatprep.subr.mxu1 (%p119_p4), %v182_v37  ;;  %v269_v42 = vsub.f32 (%p119_p4), %v179_v34, %v182_v37 }
  0x17   : >> { %135 = vadd.xlane.f32.xlu0 %v134_v8  ;;  %786 = vmatpush3.xpose.msra.mxu0 (%p119_p4), %v182_v37 }
  0x18   : > { %771 = vmatpush3.xpose.msra.mxu1 (%p119_p4), %v182_v37  ;;  %v270_v45 = vand.u32 (%p119_p4), 4294901760, %v269_v42 }
  0x1a   : > { %v271_v48 = vsub.f32 (%p119_p4), %v269_v42, %v270_v45  ;;  %790 = vmatprep.subr.mxu0 (%p119_p4), %v270_v45 }
  0x1b   : > { %v169_v35 = vld [vmem:[#allocation2] sm:$0xff] (%p119_p4)  ;;  %v170_v36 = vld [vmem:[#allocation2 + $0x8] sm:$0xff] (%p119_p4) }
  0x1c   : > { %v173_v38 = vsel (%p119_p4), %vm147_vm3, %v169_v35, 0  ;;  %v176_v39 = vsel (%p119_p4), %vm147_vm3, %v170_v36, 0  ;;  %v272_v51 = vand.u32 (%p119_p4), 4294901760, %v271_v48 }
  0x1d   : > { %v247_v40 = vand.u32 (%p119_p4), 4294901760, %v173_v38  ;;  %v257_v41 = vand.u32 (%p119_p4), 4294901760, %v176_v39 }
  0x1e   : > { %775 = vmatprep.subr.mxu1 (%p119_p4), %v272_v51 }
  0x1f   : > { %v248_v43 = vsub.f32 (%p119_p4), %v173_v38, %v247_v40  ;;  %v258_v44 = vsub.f32 (%p119_p4), %v176_v39, %v257_v41 }
  0x21   : > { %v249_v46 = vand.u32 (%p119_p4), 4294901760, %v248_v43  ;;  %v259_v47 = vand.u32 (%p119_p4), 4294901760, %v258_v44 }
  0x23   : > { %787 = vmatprep.mubr.f32.mxu0 (%p119_p4), %v249_v46  ;;  %v250_v49 = vsub.f32 (%p119_p4), %v248_v43, %v249_v46  ;;  %v260_v50 = vsub.f32 (%p119_p4), %v258_v44, %v259_v47 }
  0x24   : > { %788 = vmatmul.mubr.f32.vlgmr.msra.gmra.mrb[0].mxu0 (%p119_p4), %v259_v47 }
  0x25   : > { %v251_v52 = vand.u32 (%p119_p4), 4294901760, %v250_v49  ;;  %v261_v53 = vand.u32 (%p119_p4), 4294901760, %v260_v50  ;;  %791 = vmatpush3.xpose.msra.mxu0 (%p119_p4), %v270_v45  ;;  %792 = vmatprep.mubr.f32.mxu0 (%p119_p4), %v247_v40 }
  0x26   : > { %795 = vmatprep.subr.mxu0 (%p119_p4), %v182_v37 }
  0x27   : > { %772 = vmatprep.mubr.f32.mxu1 (%p119_p4), %v251_v52 }
  0x28   : > { %773 = vmatmul.mubr.f32.vlgmr.msra.gmra.mrb[0].mxu1 (%p119_p4), %v261_v53 }
  0x29   : > { %776 = vmatpush3.xpose.msra.mxu1 (%p119_p4), %v272_v51  ;;  %777 = vmatprep.mubr.f32.mxu1 (%p119_p4), %v247_v40 }
  0x2a   : > { %780 = vmatprep.subr.mxu1 (%p119_p4), %v269_v42 }
  0x2c   : > { %793 = vmatmul.mubr.f32.vlgmr.msra.gmra.mrb[0].mxu0 (%p119_p4), %v257_v41 }
  0x2d   : > { %796 = vmatpush3.xpose.msra.mxu0 (%p119_p4), %v182_v37  ;;  %797 = vmatprep.mubr.f32.mxu0 (%p119_p4), %v247_v40 }
  0x30   : > { %778 = vmatmul.mubr.f32.vlgmr.msra.gmra.mrb[0].mxu1 (%p119_p4), %v257_v41 }
  0x31   : > { %781 = vmatpush3.xpose.msra.mxu1 (%p119_p4), %v269_v42  ;;  %782 = vmatprep.mubr.f32.mxu1 (%p119_p4), %v248_v43 }
  0x34   : > { %798 = vmatmul.mubr.f32.vlgmr.msra.gmra.mrb[0].mxu0 (%p119_p4), %v257_v41 }
  0x38   : > { %783 = vmatmul.mubr.f32.vlgmr.msra.gmra.mrb[0].mxu1 (%p119_p4), %v258_v44 }
  0xa4   : >> { %v136_v9 = vpop.xlane.xlu0 %135 }
  0xa5   : >> { %v137_v10 = vsub.f32 %v114_v2, %v136_v9 }
  0xa7   : >> { %v138_v11 = vmul.f32 %v137_v10, %v137_v10 }
  0xa9   : >> { %v139_v12 = vsel %vm133_vm2, %v138_v11, 0.0 }
  0xaa   : >> { %v140_v13 = vrot.slane %v139_v12, 4 }
  0xac   : >> { %v141_v14 = vadd.f32 %v140_v13, %v139_v12 }
  0xae   : >> { %v142_v15 = vrot.slane %v141_v14, 2 }
  0xb0   : >> { %v143_v16 = vadd.f32 %v142_v15, %v141_v14 }
  0xb2   : >> { %v144_v17 = vrot.slane %v143_v16, 1 }
  0xb4   : >> { %v145_v18 = vadd.f32 %v144_v17, %v143_v16 }
  0xb6   : >> { %v146_v3 = vmin.f32 %v867_v3, %v145_v18  }
  0xb8   : >> { %v148_v19 = vsel %vm147_vm3, %v146_v3, -inf }
  0xb9   : >> { %149 = vmax.xlane.f32.xlu0 %v148_v19 }
 0x107   : > { %v799_v54 = vpop.f32.mrb[0].mxu0 (%p119_p4) }
 0x108   : > { %v660_v55 = vpop.f32.mrb[1].mxu0 (%p119_p4) }
 0x10b   : > { %v784_v56 = vpop.f32.mrb[0].mxu1 (%p119_p4) }
 0x10c   : > { %v800_v57 = vadd.f32 (%p119_p4), %v799_v54, %v784_v56  ;;  %v419_v58 = vpop.f32.mrb[1].mxu1 (%p119_p4) }
 0x10d   : > { %v801_v59 = vadd.f32 (%p119_p4), %v660_v55, %v419_v58 }
 0x10e   : > { %672 = vst.msk [vmem:[%s904_s15 + $0x8] sm:$0xff] (%p119_p4), %vm670_vm6, %v800_v57 }
 0x10f   : > { %671 = vst.msk [vmem:[%s904_s15] sm:$0xff] (%p119_p4), %vm670_vm6, %v801_v59 }
 0x146   : >> { %v150_v20 = vpop.xlane.xlu0 %149 }
 0x147   : >> { %vm151_vm4 = vcmp.eq.f32.partialorder %v146_v3, %v150_v20 }
 0x148   : >> { %v152_v21 = vsel %vm151_vm4, %v896_v1, 32 }
 0x149   : >> { %v153_v22 = vsel %vm147_vm3, %v152_v21, 2147483647 }
 0x14a   : >> { %v155_v23 = vshra.s32 %v153_v22, 16  ;;  %v154_v25 = vand.u32 65535, %v153_v22 }
 0x14c   : >> { %v157_v24 = vcvt.s32.f32 %v155_v23  ;;  %v156_v27 = vcvt.s32.f32 %v154_v25 }
 0x14e   : >> { %158 = vmin.xlane.f32.xlu1 %v157_v24 }
 0x1db   : >> { %v159_v26 = vpop.xlane.xlu1 %158 }
 0x1dc   : >> { %vm160_vm5 = vcmp.eq.f32.partialorder %v157_v24, %v159_v26  ;;  %v165_v29 = vcvt.f32.s32 %v159_v26 }
 0x1dd   : >> { %v161_v28 = vsel %vm160_vm5, %v156_v27, inf }
 0x1de   : >> { %162 = vmin.xlane.f32.xlu1 %v161_v28  ;;  %v166_v32 = vshll.u32 %v165_v29, 16 }
 0x26b   : >> { %v163_v30 = vpop.xlane.xlu1 %162 }
 0x26c   : >> { %v164_v31 = vcvt.f32.s32 %v163_v30 }
 0x26e   : >> { %v167_v33 = vadd.s32 %v166_v32, %v164_v31 }
 0x270   : >> { %810 = vpush %v167_v33 }
 0x29b   : > { %121 = sbr.rel (!%p119_p4) target bundleno = 17 (0x11), region = 62 }
 0x2a1   : >> { %s811_s16 = spop %810  }
 0x2a2 PF: > { %s11_s6 = sadd.s32 1, %s863_s6  }
 0x2a3   : > { %p8_p5 = scmp.ge.s32.totalorder %s11_s6, 4  }
 0x2a5   :  { %10 = sbr.rel (!%p8_p5) target bundleno = 1 (0x1), region = 73 }

</bundles_post_ra>
